<compile_context>
chip_gen: v5e
topology: v5e:2x2
jax: 0.10.0
libtpu: 0.0.40
codegen_flags: <defaults>
</compile_context>

<pallas_src>
import jax
import jax.numpy as jnp
from jax.experimental import pallas as pl
from jax.experimental.pallas import tpu as pltpu


# --------------------------------------------------------------------------
# Kernel factories
# --------------------------------------------------------------------------
def _make_fixed_shift_kernel(scale: float, c_tile: int, num_classes: int,
                             mask_classes: bool):
    """LSE with a fixed shift of `scale` (valid when |similarity| <= 1)."""

    def kernel(sim_ref, out_ref, l_ref):
        # sim_ref : (b_tile, c_tile) bf16/f32 VMEM tile of similarity
        # out_ref : (b_tile, 1)      f32     per-row logsumexp
        # l_ref   : (b_tile, 1)      f32     running sum of exp(x - s)
        c = pl.program_id(1)

        @pl.when(c == 0)
        def _init():
            l_ref[...] = jnp.zeros_like(l_ref)

        x = sim_ref[...].astype(jnp.float32) * scale            # (bt, ct)
        if mask_classes:  # only emitted when the last C tile is padded
            col = jax.lax.broadcasted_iota(jnp.int32, x.shape, 1) + c * c_tile
            x = jnp.where(col < num_classes, x, -jnp.inf)

        l_ref[...] += jnp.sum(jnp.exp(x - scale), axis=-1, keepdims=True)

        @pl.when(c == pl.num_programs(1) - 1)
        def _finalize():
            out_ref[...] = scale + jnp.log(l_ref[...])

    return kernel


def _make_online_lse_kernel(scale: float, c_tile: int, num_classes: int,
                            mask_classes: bool):
    """Flash-style online-max LSE fallback for unnormalized similarities."""

    def kernel(sim_ref, out_ref, m_ref, l_ref):
        c = pl.program_id(1)

        @pl.when(c == 0)
        def _init():
            m_ref[...] = jnp.full_like(m_ref, -jnp.inf)
            l_ref[...] = jnp.zeros_like(l_ref)

        x = sim_ref[...].astype(jnp.float32) * scale
        if mask_classes:
            col = jax.lax.broadcasted_iota(jnp.int32, x.shape, 1) + c * c_tile
            x = jnp.where(col < num_classes, x, -jnp.inf)

        m_prev = m_ref[...]
        m_new = jnp.maximum(m_prev, jnp.max(x, axis=-1, keepdims=True))
        l_ref[...] = l_ref[...] * jnp.exp(m_prev - m_new) + jnp.sum(
            jnp.exp(x - m_new), axis=-1, keepdims=True)
        m_ref[...] = m_new

        @pl.when(c == pl.num_programs(1) - 1)
        def _finalize():
            out_ref[...] = m_ref[...] + jnp.log(l_ref[...])

    return kernel


# --------------------------------------------------------------------------
# Tile selection
# --------------------------------------------------------------------------
def _round_up(x: int, m: int) -> int:
    return ((x + m - 1) // m) * m


def _pick_b_tile(B: int, unit: int, max_tile: int) -> int:
    """Unit-aligned B tile, preferring >= 2 blocks (v7x dual-TC sharding)."""
    if B <= unit:
        return B                               # block == full dim is allowed
    return min(max_tile, _round_up(pl.cdiv(B, 2), unit))


def _pick_c_tile(C: int, max_tile: int) -> int:
    """Prefer a single full-width tile, else a 128-multiple divisor of C."""
    if C <= max_tile:
        return C                               # one reduction step, no mask
    top = (max_tile // 128) * 128
    for cand in range(top, 0, -128):           # trace-time search, <= 32 iters
        if C % cand == 0:
            return cand                        # divides C -> no masking
    return top                                 # fallback: mask the last tile


# --------------------------------------------------------------------------
# Wrapper
# --------------------------------------------------------------------------
def normface_loss(similarity: jax.Array, label: jax.Array, s: float = 16.0,
                  *, bounded_similarity: bool = True,
                  b_tile_max: int = 512, c_tile_max: int = 4096) -> jax.Array:
    """NormFace forward: scalar mean cross-entropy over s-scaled similarities.

    similarity: (B, C) f32 or bf16 cosine similarities; label: (B,) int.
    bounded_similarity=True assumes |similarity| <= 1 (true for NormFace) and
    uses a fixed logsumexp shift of s; set False for unnormalized logits.
    """
    s = float(s)
    B, C = similarity.shape
    itemsize = jnp.dtype(similarity.dtype).itemsize

    # bf16 packs 2 rows per sublane, int8/fp8 pack 4 -> align the B tile.
    b_unit = {1: 32, 2: 16}.get(itemsize, 8)
    b_tile = _pick_b_tile(B, b_unit, b_tile_max)
    c_tile = _pick_c_tile(C, c_tile_max)
    nb = pl.cdiv(B, b_tile)
    nc = pl.cdiv(C, c_tile)
    mask_classes = (C % c_tile) != 0

    if bounded_similarity:
        kernel = _make_fixed_shift_kernel(s, c_tile, C, mask_classes)
        scratch = [pltpu.VMEM((b_tile, 1), jnp.float32)]          # running sum
    else:
        kernel = _make_online_lse_kernel(s, c_tile, C, mask_classes)
        scratch = [pltpu.VMEM((b_tile, 1), jnp.float32),          # running max
                   pltpu.VMEM((b_tile, 1), jnp.float32)]          # running sum

    lse = pl.pallas_call(
        kernel,
        out_shape=jax.ShapeDtypeStruct((B, 1), jnp.float32),
        grid_spec=pltpu.PrefetchScalarGridSpec(
            num_scalar_prefetch=0,
            grid=(nb, nc),
            in_specs=[
                # similarity stream, tiled over both batch and classes
                pl.BlockSpec((b_tile, c_tile), lambda b, c: (b, c)),
            ],
            out_specs=pl.BlockSpec((b_tile, 1), lambda b, c: (b, 0)),
            scratch_shapes=scratch,
        ),
        compiler_params=pltpu.CompilerParams(
            dimension_semantics=("parallel", "arbitrary"),
            # max tile 512x4096 f32 = 8 MiB, double-buffered 16 MiB: fits the
            # 32 MiB scoped limit on every generation incl. v7x (64 MiB VMEM).
            vmem_limit_bytes=32 * 1024 * 1024,
        ),
        cost_estimate=pl.CostEstimate(
            flops=5 * B * C,
            transcendentals=B * C,
            bytes_accessed=B * C * itemsize + B * 4),
    )(similarity)

    # Target logit: a B-element gather in plain XLA (negligible HBM bytes),
    # keeping the compare/select/reduce path out of the memory-bound kernel.
    tgt = jnp.take_along_axis(
        similarity.astype(jnp.float32),
        label.reshape(B, 1).astype(jnp.int32), axis=1) * s        # (B, 1)

    return jnp.mean(lse - tgt)


# --------------------------------------------------------------------------
# Demo / self-test
# --------------------------------------------------------------------------
if __name__ == "__main__":
    # NormFace has no learned parameters; only the scale s=16.0 from __init__.
    key = jax.random.PRNGKey(0)
    k_sim, k_lab = jax.random.split(key)

    # Small shapes that exercise a partial last B tile (b_tile=16 -> 16 + 4).
    B, C = 20, 400
    similarity = jax.random.uniform(k_sim, (B, C), jnp.float32,
                                    minval=-1.0, maxval=1.0)
    label = jax.random.randint(k_lab, (B,), 0, C, dtype=jnp.int32)

    # Plain-JAX reference.
    logits = 16.0 * similarity
    ref = jnp.mean(jax.nn.logsumexp(logits, axis=-1)
                   - logits[jnp.arange(B), label])

    # Default path: fixed-shift LSE (valid because |similarity| <= 1).
    loss = normface_loss(similarity, label, s=16.0)
    jax.block_until_ready(loss)
    assert jnp.allclose(loss, ref, rtol=5e-5, atol=5e-5), (loss, ref)

    # Online-max fallback (for unnormalized logits).
    loss_gen = normface_loss(similarity, label, s=16.0,
                             bounded_similarity=False)
    jax.block_until_ready(loss_gen)
    assert jnp.allclose(loss_gen, ref, rtol=5e-5, atol=5e-5), (loss_gen, ref)

    # Force small tiles: multi-step C reduction + padded-class masking +
    # partial last tiles on both axes.
    loss_tiled = normface_loss(similarity, label, s=16.0,
                               b_tile_max=8, c_tile_max=128)
    jax.block_until_ready(loss_tiled)
    assert jnp.allclose(loss_tiled, ref, rtol=5e-5, atol=5e-5), (loss_tiled, ref)

    # bf16 ingest path (halves HBM bytes for this memory-bound kernel).
    sim_bf16 = similarity.astype(jnp.bfloat16)
    loss_bf16 = normface_loss(sim_bf16, label, s=16.0)
    jax.block_until_ready(loss_bf16)
    logits_b = 16.0 * sim_bf16.astype(jnp.float32)
    ref_b = jnp.mean(jax.nn.logsumexp(logits_b, axis=-1)
                     - logits_b[jnp.arange(B), label])
    assert jnp.allclose(loss_bf16, ref_b, rtol=1e-3, atol=1e-3), (loss_bf16, ref_b)

    print("KERNEL_OK")
</pallas_src>

<mosaic_0001>
module attributes {stable_mosaic.version = 11 : i64} {
  func.func @kernel(%arg0: i32, %arg1: i32, %arg2: memref<16x400xf32, #tpu.memory_space<vmem>>, %arg3: memref<16x1xf32, #tpu.memory_space<vmem>>, %arg4: memref<16x1xf32, #tpu.memory_space<vmem>>) attributes {dimension_semantics = [#tpu.dimension_semantics<parallel>, #tpu.dimension_semantics<arbitrary>], iteration_bounds = array<i64: 2, 1>, scalar_prefetch = 0 : i64, scratch_operands = 1 : i64, tpu.core_type = #tpu.core_type<tc>, window_params = [{transform_indices = @transform_0, window_bounds = array<i64: 16, 400>}, {transform_indices = @transform_1, window_bounds = array<i64: 16, 1>}]} {
    %c0_i32 = arith.constant 0 : i32
    %0 = arith.cmpi eq, %arg1, %c0_i32 : i32
    %1 = arith.extui %0 : i1 to i32
    %c0_i32_0 = arith.constant 0 : i32
    %2 = arith.cmpi ne, %1, %c0_i32_0 : i32
    scf.if %2 {
      %cst_10 = arith.constant 0.000000e+00 : f32
      %17 = vector.broadcast %cst_10 : f32 to vector<16x1xf32>
      %c0_11 = arith.constant 0 : index
      %c0_12 = arith.constant 0 : index
      %18 = vector.load %arg4[%c0_11, %c0_12] : memref<16x1xf32, #tpu.memory_space<vmem>>, vector<16x1xf32>
      tpu.vector_store %arg4[%c0_11, %c0_12], %17 {strides = array<i32>} : memref<16x1xf32, #tpu.memory_space<vmem>>, vector<16x1xf32>,
    } else {
    }
    %c0 = arith.constant 0 : index
    %c0_1 = arith.constant 0 : index
    %3 = vector.load %arg2[%c0, %c0_1] : memref<16x400xf32, #tpu.memory_space<vmem>>, vector<16x400xf32>
    %cst = arith.constant 1.600000e+01 : f32
    %4 = vector.broadcast %cst : f32 to vector<16x400xf32>
    %5 = arith.mulf %3, %4 : vector<16x400xf32>
    %c0_2 = arith.constant 0 : index
    %c0_3 = arith.constant 0 : index
    %6 = vector.load %arg4[%c0_2, %c0_3] : memref<16x1xf32, #tpu.memory_space<vmem>>, vector<16x1xf32>
    %cst_4 = arith.constant 1.600000e+01 : f32
    %7 = vector.broadcast %cst_4 : f32 to vector<16x400xf32>
    %8 = arith.subf %5, %7 : vector<16x400xf32>
    %9 = math.exp %8 : vector<16x400xf32>
    %cst_5 = arith.constant dense<0.000000e+00> : vector<16xf32>
    %10 = vector.multi_reduction <add>, %9, %cst_5 [1] : vector<16x400xf32> to vector<16xf32>
    %11 = vector.shape_cast %10 : vector<16xf32> to vector<16x1xf32>
    %12 = arith.addf %6, %11 : vector<16x1xf32>
    %c0_6 = arith.constant 0 : index
    %c0_7 = arith.constant 0 : index
    %13 = vector.load %arg4[%c0_6, %c0_7] : memref<16x1xf32, #tpu.memory_space<vmem>>, vector<16x1xf32>
    tpu.vector_store %arg4[%c0_6, %c0_7], %12 {strides = array<i32>} : memref<16x1xf32, #tpu.memory_space<vmem>>, vector<16x1xf32>,
    %c0_i32_8 = arith.constant 0 : i32
    %14 = arith.cmpi eq, %arg1, %c0_i32_8 : i32
    %15 = arith.extui %14 : i1 to i32
    %c0_i32_9 = arith.constant 0 : i32
    %16 = arith.cmpi ne, %15, %c0_i32_9 : i32
    scf.if %16 {
      %c0_10 = arith.constant 0 : index
      %c0_11 = arith.constant 0 : index
      %17 = vector.load %arg4[%c0_10, %c0_11] : memref<16x1xf32, #tpu.memory_space<vmem>>, vector<16x1xf32>
      %18 = math.log %17 : vector<16x1xf32>
      %cst_12 = arith.constant 1.600000e+01 : f32
      %19 = vector.broadcast %cst_12 : f32 to vector<16x1xf32>
      %20 = arith.addf %19, %18 : vector<16x1xf32>
      %c0_13 = arith.constant 0 : index
      %c0_14 = arith.constant 0 : index
      %21 = vector.load %arg3[%c0_13, %c0_14] : memref<16x1xf32, #tpu.memory_space<vmem>>, vector<16x1xf32>
      tpu.vector_store %arg3[%c0_13, %c0_14], %20 {strides = array<i32>} : memref<16x1xf32, #tpu.memory_space<vmem>>, vector<16x1xf32>,
    } else {
    }
    return
  }
  func.func @transform_0(%arg0: i32, %arg1: i32) -> (i32, i32) {
    %c0_i32 = arith.constant 0 : i32
    return %arg0, %arg1 : i32, i32
  }
  func.func @transform_1(%arg0: i32, %arg1: i32) -> (i32, i32) {
    %c0_i32 = arith.constant 0 : i32
    %c0_i32_0 = arith.constant 0 : i32
    return %arg0, %c0_i32 : i32, i32
  }
}

</mosaic_0001>

<bundles_post_ra>
// kernel: tpu_custom_call.1
= control target key start
LH: loop header
LB: loop body
LE: loop exit
PB: predicated region body
PF: predicated region fallthrough
CT: control target
= control target key end

     0   :  { %6 = vsyncpa [#allocation4], 0  ;;  %s1008_s0 = inlined_call_operand.hbm [shape: f32[20,400], index: 0, kind: input, shape index: {}]   ;;  %s1009_s1 = inlined_call_operand.vmem [shape: f32[20,1], index: 1, kind: output, shape index: {}]  }
   0x1   :  { %8 = vsyncpa [#allocation4 + $0x1], 0  ;;  %s844_s6 = smov 0   ;;  %s846_s7 = smov 0  }
   0x2   :  { %s848_s8 = smov 0   ;;  %s850_s9 = smov 0  }
   0x3   :  { %s852_s10 = smov 0   ;;  %s854_s11 = smov 0  }
   0x4 LB: > { %s492_s12 = sadd.s32 4294967295, %s796_s11   ;;  %s26_s13 = sadd.s32 1, %s792_s10  ;;  %s796_s11 = sphi %s854_s11, %s14_s11   ;;  %s792_s10 = sphi %s852_s10, %s1017_s10   ;;  %s788_s9 = sphi %s850_s9, %s1016_s9   ;;  %s784_s8 = sphi %s848_s8, %s1015_s8   ;;  %s780_s7 = sphi %s846_s7, %s1014_s7   ;;  %s776_s6 = sphi %s844_s6, %s1013_s6  }
   0x5   : > { %p28_p0 = scmp.ge.s32.totalorder %s26_s13, 2  ;;  %s35_s14 = sadd.s32 1, %s784_s8 }
   0x6   : > { %p42_p1 = scmp.ne.s32.totalorder %s784_s8, %s780_s7  ;;  %p43_p2 = scmp.eq.s32.totalorder %s796_s11, 0 }
   0x7   : > { %s1019_s13 = smov (%p28_p0, %s26_s13), 0  ;;  %p48_p4 = scmp.ne.s32.totalorder %s780_s7, %s776_s6 }
   0x8   : > { %p44_p3 = por %p43_p2, %p42_p1  ;;  %s30_s15 = ssub.s32 %s792_s10, %s1019_s13 }
   0x9   : > { %p49_p5 = scmp.eq.s32.totalorder %s492_s12, 0  ;;  %p33_p6 = scmp.eq.s32.totalorder %s30_s15, 0 }
   0xa   : > { %p72_p7 = scmp.eq.s32.totalorder %s492_s12, 1  ;;  %p495_p10 = scmp.ge.s32.totalorder %s796_s11, 2 }
   0xb   : > { %p883_p8 = por %p49_p5, %p48_p4 }
   0xc   : > { %s888_s17 = scalar_select %p33_p6, %s784_s8, %s35_s14  }
   0xd   : > { %p890_p9 = por %p72_p7, %p42_p1  ;;  %94 = sbr.rel (%p495_p10) target bundleno = 54 (0x36), region = 16 }
  0x12   : > { %97 = sbr.rel (!%p44_p3) target bundleno = 54 (0x36), region = 20  ;;  %s98_s19 = sand.u32 (%p44_p3), 1, %s784_s8  }
  0x13   : > { %s497_s20 = sshll.u32 (%p44_p3), %s792_s10, 1  ;;  %s496_s21 = sshll.u32 (%p44_p3), %s98_s19, 6 }
  0x14   : > { %s105_s22 = ssub.s32 (%p44_p3), 3, %s497_s20  ;;  %s900_s26 = scalar_lea.sflag (%p44_p3), [#allocation4], %s98_s19 }
  0x15   : > { %p106_p11 = scmp.lt.s32.totalorder (%p44_p3), %s105_s22, 2  ;;  %s102_s27 = scalar_lea.vmem (%p44_p3), [#allocation3], %s496_s21 }
  0x17   : > { %s1021_s22 = smov (!%p106_p11, %s105_s22), 2 }
  0x18   : > { %s533_s23 = sshll.u32 %s1021_s22, 5 }
  0x19   : > { %s110_s24 = ssub.s32 64, %s533_s23 }
  0x1a   : > { %s111_s25 = sshll.u32 %s110_s24, 4 }
  0x1b   : > { %112 = vsyncadd %s900_s26, %s111_s25  ;;  %p903_p12 = scmp.ne.s32.totalorder %s533_s23, 0  ;;  %s535_s29 = sshll.u32 %s792_s10, 6 }
  0x1c   : > { %s117_s3 = scalar_lea.hbm %s1008_s0, %s535_s29  ;;  %s911_s4 = sshll.u32 %s102_s27, 4  ;;  %s122_s4 = int_to_ptr.vmem [resolvable:$true] %s911_s4 }
  0x1d   : > { %s119_s5 = sshll.u32 %s117_s3, 4  ;;  %s504_s6 = sshll.u32 %s1021_s22, 9  ;;  %s914_s5 = int_to_ptr.hbm [resolvable:$true] %s119_s5 }
  0x1e   : > { %s675_s12 = sshra.s32 %s914_s5, 4  ;;  %s677_s14 = sshrl.u32 %s504_s6, 4  ;;  %s676_s12 = int_to_ptr.hbm [resolvable:$true] %s675_s12 }
  0x1f   : > { %s682_s15 = scalar_lea.hbm %s676_s12, %s677_s14  ;;  %s686_s21 = scalar_lea.hbm %s1008_s0, 96 }
  0x20   : > { %p683_p13 = scmp.ne.s32.totalorder %s676_s12, %s682_s15  ;;  %p688_p2 = scmp.lt.s32.totalorder %s686_s21, %s682_s15 }
  0x22   : > { %p684_p0 = pnand %p683_p13, %p903_p12 }
  0x24   : > { %p685_p1 = pneg %p684_p0 }
  0x26   : > { %p690_p3 = pnand %p688_p2, %p685_p1 }
  0x28   : > { %693 = shalt.err (!%p690_p3)
}
  0x29   : > { %s694_s23 = sshra.s32 %s122_s4, 4  ;;  %s830_s25 = smov [#allocation3]   ;;  %s695_s23 = int_to_ptr.vmem [resolvable:$true] %s694_s23 }
  0x2a   : > { %s701_s24 = scalar_lea.vmem %s695_s23, %s677_s14  ;;  %s705_s27 = scalar_lea.vmem %s830_s25, 128 }
  0x2b   : > { %p702_p4 = scmp.ne.s32.totalorder %s695_s23, %s701_s24  ;;  %p707_p7 = scmp.lt.s32.totalorder %s705_s27, %s701_s24 }
  0x2d   : > { %p703_p5 = pnand %p702_p4, %p903_p12 }
  0x2f   : > { %p704_p6 = pneg %p703_p5 }
  0x31   : > { %p709_p10 = pnand %p707_p7, %p704_p6 }
  0x33   : > { %712 = shalt.err (!%p709_p10)
}
  0x34   : > { %s831_s29 = smov 512   ;;  %s832_s30 = smov 32  }
  0x35   : > { %127 = dma.hbm_to_vmem [thread:$0]  (%p903_p12), %s914_s5, %s504_s6, %s122_s4, %s900_s26, %s831_s29, %s831_s29, %s832_s30  }
  0x36 PF: > { %p505_p11 = scmp.ge.s32.totalorder %s796_s11, 1  ;;  %p129_p13 = scmp.lt.s32.totalorder %s796_s11, 3 }
  0x38   : > { %p130_p0 = pnand %p505_p11, %p129_p13 }
  0x39   : > { %s940_s2 = sand.u32 (!%p130_p0), 1, %s780_s7  }
  0x3a   : > { %133 = sbr.rel (%p130_p0) target bundleno = 270 (0x10e), region = 24  ;;  %s506_s3 = sshll.u32 (!%p130_p0), %s940_s2, 6 }
  0x3b   : > { %s136_s12 = scalar_lea.sflag (!%p130_p0), [#allocation4], %s940_s2  ;;  %s139_s28 = scalar_lea.vmem (!%p130_p0), [#allocation3], %s506_s3 }
  0x3f   : > { %771 = dma.done.wait (%p883_p8), %s136_s12, 1024  }
  0x40   : > { %773 = vsyncadd (%p883_p8), %s136_s12, 4294966272  ;;  %vm174_vm0 = vcmask 7168   ;;  %v833_v0 = vmov 0.0   ;;  %v177_v1 = vld [vmem:[%s139_s28] sm:$0xff]  ;;  %v178_v2 = vld [vmem:[%s139_s28 + $0x8] sm:$0xff]  ;;  %vm221_vm1 = vcmask 130048  }
  0x41   : > { %175 = vst.msk [vmem:[#allocation2] sm:$0xff] %vm174_vm0, %v833_v0  ;;  %v179_v3 = vld [vmem:[%s139_s28 + $0x10] sm:$0xff]  ;;  %v180_v4 = vld [vmem:[%s139_s28 + $0x18] sm:$0xff]  ;;  %v185_v5 = vmul.f32 16.0, %v177_v1  ;;  %v186_v6 = vmul.f32 16.0, %v178_v2  ;;  %v181_v8 = vld [vmem:[%s139_s28 + $0x20] sm:$0xff] }
  0x42   : > { %176 = vst.msk [vmem:[#allocation2 + $0x8] sm:$0xff] %vm174_vm0, %v833_v0  ;;  %v187_v7 = vmul.f32 16.0, %v179_v3  ;;  %v182_v9 = vld [vmem:[%s139_s28 + $0x28] sm:$0xff]  ;;  %v188_v10 = vmul.f32 16.0, %v180_v4  ;;  %v183_v11 = vld [vmem:[%s139_s28 + $0x30] sm:$0xff]  ;;  %v184_v12 = vld [vmem:[%s139_s28 + $0x38] sm:$0xff] }
  0x43   : > { %v189_v13 = vmul.f32 16.0, %v181_v8  ;;  %v190_v14 = vmul.f32 16.0, %v182_v9  ;;  %v508_v15 = vadd.f32 -16.0, %v185_v5  ;;  %v509_v16 = vadd.f32 -16.0, %v186_v6  ;;  %s507_s16 = sshll.u32 %s940_s2, 4  ;;  %s517_s26 = sshll.u32 (%p890_p9), %s788_s9, 1 }
  0x44   : > { %v510_v17 = vadd.f32 -16.0, %v187_v7  ;;  %v191_v18 = vmul.f32 16.0, %v183_v11  ;;  %v511_v19 = vadd.f32 -16.0, %v188_v10  ;;  %v192_v20 = vmul.f32 16.0, %v184_v12  ;;  %s953_s22 = scalar_lea.vmem [#allocation5], %s507_s16   ;;  %s536_s4 = sshll.u32 (%p890_p9), %s788_s9, 4 }
  0x45   : > { %v512_v21 = vadd.f32 -16.0, %v189_v13  ;;  %v513_v22 = vadd.f32 -16.0, %v190_v14  ;;  %v203_v23 = vmul.f32 1.442695, %v508_v15  ;;  %v205_v24 = vmul.f32 1.442695, %v509_v16  ;;  %s966_s15 = scalar_lea.vmem (%p890_p9), %s1009_s1, %s536_s4  }
  0x46   : > { %v207_v25 = vmul.f32 1.442695, %v510_v17  ;;  %v209_v26 = vmul.f32 1.442695, %v511_v19  ;;  %v514_v27 = vadd.f32 -16.0, %v191_v18  ;;  %v515_v28 = vadd.f32 -16.0, %v192_v20 }
  0x47   : > { %655 = vpow2.f32 %v203_v23  ;;  %v211_v29 = vmul.f32 1.442695, %v512_v21  ;;  %v213_v30 = vmul.f32 1.442695, %v513_v22  ;;  %s258_s5 = ssub.s32 (%p890_p9), 3, %s517_s26 }
  0x48   : > { %657 = vpow2.f32 %v205_v24  ;;  %v215_v31 = vmul.f32 1.442695, %v514_v27  ;;  %v217_v32 = vmul.f32 1.442695, %v515_v28  ;;  %v193_v49 = vld [vmem:[#allocation2] sm:$0xff]  ;;  %p259_p8 = scmp.lt.s32.totalorder (%p890_p9), %s258_s5, 2 }
  0x49   : > { %659 = vpow2.f32 %v207_v25  ;;  %v194_v52 = vld [vmem:[#allocation2 + $0x8] sm:$0xff] }
  0x4a   : > { %661 = vpow2.f32 %v209_v26 }
  0x4b   : > { %663 = vpow2.f32 %v211_v29 }
  0x4c   : > { %665 = vpow2.f32 %v213_v30 }
  0x4d   : > { %v656_v33 = vpop.eup %655  ;;  %667 = vpow2.f32 %v215_v31 }
  0x4e   : > { %v658_v34 = vpop.eup %657  ;;  %669 = vpow2.f32 %v217_v32 }
  0x4f   : > { %v660_v35 = vpop.eup %659  ;;  %v219_v36 = vadd.f32 %v658_v34, %v656_v33 }
  0x50   : > { %v662_v37 = vpop.eup %661 }
  0x51   : > { %v664_v38 = vpop.eup %663  ;;  %v220_v39 = vadd.f32 %v660_v35, %v219_v36  ;;  %v222_v40 = vsel %vm221_vm1, %v662_v37, 0.0 }
  0x52   : > { %v666_v41 = vpop.eup %665 }
  0x53   : > { %v668_v42 = vpop.eup %667  ;;  %v223_v43 = vadd.f32 %v222_v40, %v220_v39  ;;  %v226_v44 = vadd.f32 %v666_v41, %v664_v38 }
  0x54   : > { %v670_v45 = vpop.eup %669 }
  0x55   : > { %224 = vadd.xlane.f32.xlu0 %v223_v43  ;;  %v227_v46 = vadd.f32 %v668_v42, %v226_v44  ;;  %v228_v47 = vsel %vm221_vm1, %v670_v45, 0.0 }
  0x57   : > { %v229_v48 = vadd.f32 %v228_v47, %v227_v46 }
  0x5d   : > { %230 = vadd.xlane.f32.xlu0 %v229_v48 }
  0xc8   : > { %v225_v50 = vpop.xlane.xlu0 %224 }
  0xc9   : > { %v232_v51 = vadd.f32 %v225_v50, %v193_v49 }
  0xcb   : > { %235 = vst.msk [vmem:[#allocation2] sm:$0xff] %vm174_vm0, %v232_v51 }
  0xd0   : > { %v231_v53 = vpop.xlane.xlu0 %230 }
  0xd1   : > { %v233_v54 = vadd.f32 %v231_v53, %v194_v52 }
  0xd2   : > { %v240_v55 = vld [vmem:[#allocation2] sm:$0xff] }
  0xd3   : > { %671 = vlog2.f32 %v240_v55  ;;  %236 = vst.msk [vmem:[#allocation2 + $0x8] sm:$0xff] %vm174_vm0, %v233_v54 }
  0xd9   : > { %v672_v56 = vpop.eup %671 }
  0xda   : > { %v243_v57 = vmul.f32 0.6931472, %v672_v56  ;;  %v241_v58 = vld [vmem:[#allocation2 + $0x8] sm:$0xff] }
  0xdb   : > { %673 = vlog2.f32 %v241_v58 }
  0xdc   : > { %v246_v59 = vadd.f32 16.0, %v243_v57 }
  0xde   : > { %248 = vst.msk [vmem:[%s953_s22] sm:$0xff] %vm174_vm0, %v246_v59 }
  0xe1   : > { %v674_v60 = vpop.eup %673 }
  0xe2   : > { %v245_v61 = vmul.f32 0.6931472, %v674_v60  ;;  %256 = sbr.rel (!%p890_p9) target bundleno = 270 (0x10e), region = 40 }
  0xe4   : > { %v247_v62 = vadd.f32 16.0, %v245_v61 }
  0xe6   : > { %249 = vst.msk [vmem:[%s953_s22 + $0x8] sm:$0xff] %vm174_vm0, %v247_v62 }
  0xe7   : > { %s1023_s5 = smov (!%p259_p8, %s258_s5), 2 }
  0xe8   : > { %s518_s19 = sshll.u32 %s1023_s5, 3 }
  0xe9   : > { %p521_p12 = scmp.eq.s32.totalorder %s518_s19, 0 }
  0xea   : > { %s972_s18 = sshrl.u32 (!%p521_p12), %s1023_s5, 1 }
  0xeb   : > { %267 = sbr.rel (%p521_p12) target bundleno = 270 (0x10e), region = 44  ;;  %p522_p9 = scmp.le.s32.totalorder (!%p521_p12), %s972_s18, 0 }
  0xf0   : > { %437 = sbr.rel (%p522_p9) target bundleno = 253 (0xfd), region = 126  ;;  %s798_s9 = smov (!%p522_p9), %s966_s15  }
  0xf1   : > { %s802_s20 = smov (!%p522_p9), %s953_s22   ;;  %s806_s21 = smov (!%p522_p9), 0  }
  0xf2   : > { %s810_s23 = smov (!%p522_p9), 0  }
  0xf5 LB: >> { %v332_v63 = vld [vmem:[%s804_s20] sm:$0xff]  ;;  %v334_v0 = vld [vmem:[%s804_s20 + $0x8] sm:$0xff]  ;;  %s336_s24 = sadd.s32 1, %s808_s21  ;;  %s326_s23 = sadd.s32 1, %s812_s23   ;;  %s812_s23 = sphi %s810_s23, %s326_s23   ;;  %s808_s21 = sphi %s806_s21, %s807_s21   ;;  %s804_s20 = sphi %s802_s20, %s341_s20   ;;  %s800_s9 = sphi %s798_s9, %s342_s9  }
  0xf6   : >> { %333 = vst [vmem:[%s800_s9] sm:$0xff] %v332_v63  ;;  %p337_p1 = scmp.ge.s32.totalorder %s336_s24, %s972_s18  ;;  %p325_p2 = scmp.ge.s32.totalorder %s326_s23, %s972_s18 }
  0xf7   : >> { %335 = vst [vmem:[%s800_s9 + $0x8] sm:$0xff] %v334_v0 }
  0xf8   : >> { %s1025_s24 = smov (%p337_p1, %s336_s24), 0  ;;  %328 = sbr.rel (!%p325_p2) target bundleno = 245 (0xf5), region = 132 }
  0xf9   : >> { %s523_s25 = sshll.u32 %s1025_s24, 4  ;;  %s807_s21 = smov %s1025_s24  }
  0xfa   : >> { %s341_s20 = scalar_lea.vmem %s953_s22, %s523_s25 [#allocation5]   ;;  %s342_s9 = scalar_lea.vmem %s966_s15, %s523_s25  }
  0xfd PF: > { %s982_s27 = sand.u32 1, %s1023_s5   ;;  %s537_s29 = sshll.u32 %s972_s18, 4 }
  0xfe   : > { %s347_s30 = scalar_lea.vmem %s953_s22, %s537_s29 [#allocation5]   ;;  %s349_s2 = scalar_lea.vmem %s966_s15, %s537_s29  }
  0xff   : > { %p528_p3 = scmp.le.s32.totalorder %s982_s27, 0 }
 0x100   : > { %s814_s3 = smov (!%p528_p3), %s349_s2   ;;  %s818_s12 = smov (!%p528_p3), %s347_s30  }
 0x101   : > { %451 = sbr.rel (%p528_p3) target bundleno = 270 (0x10e), region = 137  ;;  %s822_s28 = smov (!%p528_p3), 0  }
 0x102   : > { %s826_s16 = smov (!%p528_p3), 0  }
 0x106 LB: >> { %v359_v1 = vld [vmem:[%s820_s12] sm:$0xff]  ;;  %s361_s26 = sadd.s32 1, %s824_s28  ;;  %s353_s16 = sadd.s32 1, %s828_s16   ;;  %s828_s16 = sphi %s826_s16, %s353_s16   ;;  %s824_s28 = sphi %s822_s28, %s823_s28   ;;  %s820_s12 = sphi %s818_s12, %s366_s12   ;;  %s816_s3 = sphi %s814_s3, %s367_s3  }
 0x107   : >> { %360 = vst [vmem:[%s816_s3] sm:$0xff] %v359_v1  ;;  %p362_p4 = scmp.ge.s32.totalorder %s361_s26, %s982_s27  ;;  %p352_p5 = scmp.ge.s32.totalorder %s353_s16, %s982_s27 }
 0x109   : >> { %s1027_s26 = smov (%p362_p4, %s361_s26), 0  ;;  %355 = sbr.rel (!%p352_p5) target bundleno = 262 (0x106), region = 143 }
 0x10a   : >> { %s529_s22 = sshll.u32 %s1027_s26, 3  ;;  %s823_s28 = smov %s1027_s26  }
 0x10b   : >> { %s366_s12 = scalar_lea.vmem %s347_s30, %s529_s22 [#allocation5]   ;;  %s367_s3 = scalar_lea.vmem %s349_s2, %s529_s22  }
 0x10e PF: > { %s14_s11 = sadd.s32 1, %s796_s11   ;;  %s1013_s6 = smov %s780_s7 }
 0x10f   : > { %p11_p6 = scmp.ge.s32.totalorder %s14_s11, 4   ;;  %s1014_s7 = smov %s784_s8 }
 0x110   : > { %s1015_s8 = smov %s888_s17  ;;  %s1016_s9 = smov %s792_s10 }
 0x111   : > { %s1017_s10 = smov %s1019_s13  ;;  %13 = sbr.rel (!%p11_p6) target bundleno = 4 (0x4), region = 154 }
 0x116   :  { %383 = vsyncpa [#allocation4], 1 }
 0x117   :  { %385 = vsyncpa [#allocation4 + $0x1], 1 }

</bundles_post_ra>
